<compile_context>
chip_gen: v7x
topology: tpu7x:2x2x1
jax: 0.10.0
libtpu: 0.0.40
codegen_flags: <defaults>
</compile_context>

<pallas_src>
import functools

import jax
import jax.numpy as jnp
from jax.experimental import pallas as pl
from jax.experimental.pallas import tpu as pltpu


def _lambda_loss_kernel(log_w_ref, shift_ref, out_ref, m_sc, l_sc, *,
                        batch, n_total, tile_rows, tile_n,
                        mask_rows, mask_cols):
    """One (row-tile, n-tile) step of a streamed, online logsumexp."""
    i = pl.program_id(0)
    j = pl.program_id(1)

    @pl.when(j == 0)
    def _():
        m_sc[...] = jnp.full_like(m_sc, -jnp.inf)
        l_sc[...] = jnp.zeros_like(l_sc)

    # (tile_rows, tile_n); upcast bf16 -> f32 for the logsumexp math.
    x = log_w_ref[...].astype(jnp.float32)
    lprobs = x + shift_ref[...]                       # broadcast (1, tile_n)

    if mask_cols:  # ragged last n tile: out-of-range lanes read garbage
        col = j * tile_n + jax.lax.broadcasted_iota(jnp.int32, lprobs.shape, 1)
        lprobs = jnp.where(col < n_total, lprobs, -jnp.inf)

    # Online (flash-style) logsumexp update over the inner N axis.
    m_prev = m_sc[...]                                          # (tile_rows, 1)
    m_new = jnp.maximum(m_prev, jnp.max(lprobs, axis=-1, keepdims=True))
    m_safe = jnp.where(jnp.isfinite(m_new), m_new, 0.0)         # all -inf guard
    l_sc[...] = (jnp.exp(m_prev - m_safe) * l_sc[...]
                 + jnp.sum(jnp.exp(lprobs - m_safe), axis=-1, keepdims=True))
    m_sc[...] = m_new

    @pl.when(j == pl.num_programs(1) - 1)
    def _():
        lse = m_sc[...] + jnp.log(l_sc[...])                    # (tile_rows, 1)
        if mask_rows:  # ragged last row tile reads padding/garbage rows
            row = i * tile_rows + jax.lax.broadcasted_iota(jnp.int32, lse.shape, 0)
            lse = jnp.where(row < batch, lse, 0.0)
        # Lane-dense (1, 8, 128) block filled with this tile's partial sum ->
        # unmasked vector store; the wrapper reads element [:, 0, 0].
        out_ref[...] = jnp.full(out_ref.shape, jnp.sum(lse), dtype=out_ref.dtype)


def _choose_tiling(batch, n, itemsize):
    """Pick (tile_rows, tile_n) from an f32-working-set VMEM budget."""
    row_pack = 16 if itemsize < 4 else 8          # bf16 packs 2 rows / sublane
    # Per-step element budget: 2x double-buffered input (itemsize each) plus
    # ~2 f32 intermediates (lprobs / exp), ~12 MiB total per step.
    elem_budget = (12 << 20) // (2 * itemsize + 8)

    # Column (N) tiling: inner "arbitrary" reduction axis keeps every
    # generation in the 2-4 MiB DMA sweet spot regardless of N.
    if n * row_pack <= elem_budget:
        tile_n = n
    else:
        tile_n = max(128, ((elem_budget // row_pack) // 128) * 128)
    num_n_tiles = pl.cdiv(n, tile_n)

    rows_budget = max(row_pack, ((elem_budget // tile_n) // row_pack) * row_pack)
    total_bytes = batch * n * itemsize
    if batch > rows_budget:
        tile_rows = rows_budget
    elif total_bytes > (1 << 20) and batch >= 2 * row_pack and num_n_tiles == 1:
        # Medium batch: never take it as one block -- split into a few balanced
        # row tiles so DMA overlaps compute and v7x can use both TensorCores.
        target_tiles = min(4, batch // row_pack)
        tile_rows = pl.cdiv(pl.cdiv(batch, target_tiles), row_pack) * row_pack
    else:
        tile_rows = batch
    num_row_tiles = pl.cdiv(batch, tile_rows)
    return tile_rows, tile_n, num_row_tiles, num_n_tiles


def lambda_optimiser_forward(log_w, lambda_guess=1.0, *,
                             _tile_rows=None, _tile_n=None):
    """loss = -sum_b logsumexp_n(log_w - lgamma(n+1) + n*log_lam - exp(log_lam))."""
    log_w = jnp.asarray(log_w)                    # f32 or bf16; upcast in-kernel
    if log_w.ndim == 1:
        log_w = log_w[None, :]
    B, N = log_w.shape
    itemsize = log_w.dtype.itemsize

    # Scalar parameter setup (matches LambdaOptimiser.__init__).
    log_lam = jnp.log(jnp.clip(jnp.asarray(lambda_guess, jnp.float32), 0.1))

    # Fused per-lane shift table (glue; depends only on N and log_lam).
    # float32 arange is exact for N < 2^24.
    n_idx = jnp.arange(N, dtype=jnp.float32)
    shift_tab = (
        -jax.scipy.special.gammaln(n_idx + 1.0) + n_idx * log_lam - jnp.exp(log_lam)
    ).reshape(1, N).astype(jnp.float32)

    tile_rows, tile_n, num_row_tiles, num_n_tiles = _choose_tiling(B, N, itemsize)
    if _tile_rows is not None:                    # test hooks
        tile_rows = _tile_rows
        num_row_tiles = pl.cdiv(B, tile_rows)
    if _tile_n is not None:
        tile_n = _tile_n
        num_n_tiles = pl.cdiv(N, tile_n)

    # Explicit VMEM budget: double-buffered input + f32 intermediates + scratch,
    # +50% headroom; capped at 32 MiB (safe on v5e/v6e/v7x scoped limits).
    tile_elems = tile_rows * tile_n
    est_vmem = (2 * tile_elems * itemsize         # double-buffered streamed input
                + 3 * tile_elems * 4              # f32 lprobs / exp intermediates
                + 4 * tile_n * 4                  # shift table (double-buffered)
                + 2 * 8 * 128 * 4                 # output block (double-buffered)
                + 4 * tile_rows * 4)              # m/l scratch
    vmem_limit = int(min(32 << 20, max(8 << 20, (est_vmem * 3) // 2)))

    kernel = functools.partial(
        _lambda_loss_kernel,
        batch=B, n_total=N, tile_rows=tile_rows, tile_n=tile_n,
        mask_rows=(B % tile_rows != 0), mask_cols=(N % tile_n != 0))

    cost = pl.CostEstimate(
        flops=5 * B * N,
        transcendentals=B * N,
        bytes_accessed=B * N * itemsize + N * 4 + num_row_tiles * 8 * 128 * 4)

    partials = pl.pallas_call(
        kernel,
        out_shape=jax.ShapeDtypeStruct((num_row_tiles, 8, 128), jnp.float32),
        grid=(num_row_tiles, num_n_tiles),
        in_specs=[
            pl.BlockSpec((tile_rows, tile_n), lambda i, j: (i, j)),  # streamed log_w
            pl.BlockSpec((1, tile_n), lambda i, j: (0, j)),          # shift table
        ],
        out_specs=pl.BlockSpec((1, 8, 128), lambda i, j: (i, 0, 0)),
        scratch_shapes=[pltpu.VMEM((tile_rows, 1), jnp.float32),     # running max
                        pltpu.VMEM((tile_rows, 1), jnp.float32)],    # running sum-exp
        compiler_params=pltpu.CompilerParams(
            dimension_semantics=("parallel", "arbitrary"),
            vmem_limit_bytes=vmem_limit),
        cost_estimate=cost,
    )(log_w, shift_tab)

    return -jnp.sum(partials[:, 0, 0])


def _reference(log_w, lambda_guess):
    log_w = jnp.asarray(log_w, jnp.float32)
    N = log_w.shape[-1]
    log_lam = jnp.log(jnp.clip(jnp.asarray(lambda_guess, jnp.float32), 0.1))
    n = jnp.arange(N, dtype=jnp.float32)
    lprobs = (log_w
              - jax.scipy.special.gammaln(n + 1.0)
              + n * log_lam
              - jnp.exp(log_lam))
    return -jnp.sum(jax.scipy.special.logsumexp(lprobs, axis=-1))


if __name__ == "__main__":
    key = jax.random.PRNGKey(0)
    B, N = 8, 128
    log_w = jax.random.normal(key, (B, N), dtype=jnp.float32)
    lambda_guess = 1.0

    loss = jax.block_until_ready(lambda_optimiser_forward(log_w, lambda_guess))
    ref = jax.block_until_ready(_reference(log_w, lambda_guess))
    assert jnp.allclose(loss, ref, rtol=1e-5, atol=1e-4), (loss, ref)

    # Multi-tile 2-D grid with ragged rows AND ragged inner-N axis (exercises the
    # online logsumexp carry, the column mask, and the row mask) via test hooks.
    B2, N2 = 24, 300
    log_w2 = jax.random.normal(jax.random.PRNGKey(1), (B2, N2), dtype=jnp.float32)
    loss2 = jax.block_until_ready(
        lambda_optimiser_forward(log_w2, 2.5, _tile_rows=16, _tile_n=128))
    ref2 = jax.block_until_ready(_reference(log_w2, 2.5))
    assert jnp.allclose(loss2, ref2, rtol=1e-5, atol=1e-4), (loss2, ref2)

    # bf16 input path (upcast happens inside the kernel; 16-row packing branch).
    loss3 = jax.block_until_ready(
        lambda_optimiser_forward(log_w.astype(jnp.bfloat16), lambda_guess))
    ref3 = jax.block_until_ready(
        _reference(log_w.astype(jnp.bfloat16).astype(jnp.float32), lambda_guess))
    assert jnp.allclose(loss3, ref3, rtol=2e-2, atol=2e-2), (loss3, ref3)

    print("KERNEL_OK")
</pallas_src>

<mosaic_0001>
module attributes {stable_mosaic.version = 11 : i64} {
  func.func @_lambda_loss_kernel(%arg0: i32, %arg1: i32, %arg2: memref<8x128xf32, #tpu.memory_space<vmem>>, %arg3: memref<1x128xf32, #tpu.memory_space<vmem>>, %arg4: memref<1x8x128xf32, #tpu.memory_space<vmem>>, %arg5: memref<8x1xf32, #tpu.memory_space<vmem>>, %arg6: memref<8x1xf32, #tpu.memory_space<vmem>>) attributes {dimension_semantics = [#tpu.dimension_semantics<parallel>, #tpu.dimension_semantics<arbitrary>], iteration_bounds = array<i64: 1, 1>, scalar_prefetch = 0 : i64, scratch_operands = 2 : i64, tpu.core_type = #tpu.core_type<tc>, window_params = [{transform_indices = @transform_0, window_bounds = array<i64: 8, 128>}, {transform_indices = @transform_1, window_bounds = array<i64: 1, 128>}, {transform_indices = @transform_2, window_bounds = array<i64: 1, 8, 128>}]} {
    %c0_i32 = arith.constant 0 : i32
    %0 = arith.cmpi eq, %arg1, %c0_i32 : i32
    %1 = arith.extui %0 : i1 to i32
    %c0_i32_0 = arith.constant 0 : i32
    %2 = arith.cmpi ne, %1, %c0_i32_0 : i32
    scf.if %2 {
      %cst_17 = arith.constant 0xFF800000 : f32
      %30 = vector.broadcast %cst_17 : f32 to vector<8x1xf32>
      %c0_18 = arith.constant 0 : index
      %c0_19 = arith.constant 0 : index
      %31 = vector.load %arg5[%c0_18, %c0_19] : memref<8x1xf32, #tpu.memory_space<vmem>>, vector<8x1xf32>
      tpu.vector_store %arg5[%c0_18, %c0_19], %30 {strides = array<i32>} : memref<8x1xf32, #tpu.memory_space<vmem>>, vector<8x1xf32>,
      %cst_20 = arith.constant 0.000000e+00 : f32
      %32 = vector.broadcast %cst_20 : f32 to vector<8x1xf32>
      %c0_21 = arith.constant 0 : index
      %c0_22 = arith.constant 0 : index
      %33 = vector.load %arg6[%c0_21, %c0_22] : memref<8x1xf32, #tpu.memory_space<vmem>>, vector<8x1xf32>
      tpu.vector_store %arg6[%c0_21, %c0_22], %32 {strides = array<i32>} : memref<8x1xf32, #tpu.memory_space<vmem>>, vector<8x1xf32>,
    } else {
    }
    %c0 = arith.constant 0 : index
    %c0_1 = arith.constant 0 : index
    %3 = vector.load %arg2[%c0, %c0_1] : memref<8x128xf32, #tpu.memory_space<vmem>>, vector<8x128xf32>
    %c0_2 = arith.constant 0 : index
    %c0_3 = arith.constant 0 : index
    %4 = vector.load %arg3[%c0_2, %c0_3] : memref<1x128xf32, #tpu.memory_space<vmem>>, vector<1x128xf32>
    %5 = vector.broadcast %4 : vector<1x128xf32> to vector<8x128xf32>
    %6 = arith.addf %3, %5 : vector<8x128xf32>
    %c0_4 = arith.constant 0 : index
    %c0_5 = arith.constant 0 : index
    %7 = vector.load %arg5[%c0_4, %c0_5] : memref<8x1xf32, #tpu.memory_space<vmem>>, vector<8x1xf32>
    %cst = arith.constant dense<0xFF800000> : vector<8xf32>
    %8 = vector.multi_reduction <maximumf>, %6, %cst [1] : vector<8x128xf32> to vector<8xf32>
    %9 = vector.shape_cast %8 : vector<8xf32> to vector<8x1xf32>
    %10 = arith.maximumf %7, %9 : vector<8x1xf32>
    %11 = tpu.weird %10 : vector<8x1xf32> -> vector<8x1xi1>
    %cst_6 = arith.constant dense<true> : vector<8x1xi1>
    %12 = arith.xori %11, %cst_6 : vector<8x1xi1>
    %cst_7 = arith.constant 0.000000e+00 : f32
    %13 = vector.broadcast %cst_7 : f32 to vector<8x1xf32>
    %14 = arith.select %12, %10, %13 : vector<8x1xi1>, vector<8x1xf32>
    %15 = arith.subf %7, %14 : vector<8x1xf32>
    %16 = math.exp %15 : vector<8x1xf32>
    %c0_8 = arith.constant 0 : index
    %c0_9 = arith.constant 0 : index
    %17 = vector.load %arg6[%c0_8, %c0_9] : memref<8x1xf32, #tpu.memory_space<vmem>>, vector<8x1xf32>
    %18 = arith.mulf %16, %17 : vector<8x1xf32>
    %19 = vector.broadcast %14 : vector<8x1xf32> to vector<8x128xf32>
    %20 = arith.subf %6, %19 : vector<8x128xf32>
    %21 = math.exp %20 : vector<8x128xf32>
    %cst_10 = arith.constant dense<0.000000e+00> : vector<8xf32>
    %22 = vector.multi_reduction <add>, %21, %cst_10 [1] : vector<8x128xf32> to vector<8xf32>
    %23 = vector.shape_cast %22 : vector<8xf32> to vector<8x1xf32>
    %24 = arith.addf %18, %23 : vector<8x1xf32>
    %c0_11 = arith.constant 0 : index
    %c0_12 = arith.constant 0 : index
    %25 = vector.load %arg6[%c0_11, %c0_12] : memref<8x1xf32, #tpu.memory_space<vmem>>, vector<8x1xf32>
    tpu.vector_store %arg6[%c0_11, %c0_12], %24 {strides = array<i32>} : memref<8x1xf32, #tpu.memory_space<vmem>>, vector<8x1xf32>,
    %c0_13 = arith.constant 0 : index
    %c0_14 = arith.constant 0 : index
    %26 = vector.load %arg5[%c0_13, %c0_14] : memref<8x1xf32, #tpu.memory_space<vmem>>, vector<8x1xf32>
    tpu.vector_store %arg5[%c0_13, %c0_14], %10 {strides = array<i32>} : memref<8x1xf32, #tpu.memory_space<vmem>>, vector<8x1xf32>,
    %c0_i32_15 = arith.constant 0 : i32
    %27 = arith.cmpi eq, %arg1, %c0_i32_15 : i32
    %28 = arith.extui %27 : i1 to i32
    %c0_i32_16 = arith.constant 0 : i32
    %29 = arith.cmpi ne, %28, %c0_i32_16 : i32
    scf.if %29 {
      %c0_17 = arith.constant 0 : index
      %c0_18 = arith.constant 0 : index
      %30 = vector.load %arg5[%c0_17, %c0_18] : memref<8x1xf32, #tpu.memory_space<vmem>>, vector<8x1xf32>
      %c0_19 = arith.constant 0 : index
      %c0_20 = arith.constant 0 : index
      %31 = vector.load %arg6[%c0_19, %c0_20] : memref<8x1xf32, #tpu.memory_space<vmem>>, vector<8x1xf32>
      %32 = math.log %31 : vector<8x1xf32>
      %33 = arith.addf %30, %32 : vector<8x1xf32>
      %34 = vector.shape_cast %33 : vector<8x1xf32> to vector<1x8x1xf32>
      %cst_21 = arith.constant dense<0.000000e+00> : vector<1xf32>
      %35 = vector.multi_reduction <add>, %34, %cst_21 [1, 2] : vector<1x8x1xf32> to vector<1xf32>
      %36 = vector.shape_cast %35 : vector<1xf32> to vector<1x1x1xf32>
      %37 = vector.extract %36[0, 0, 0] : f32 from vector<1x1x1xf32>
      %38 = vector.broadcast %37 : f32 to vector<1x8x128xf32>
      %c0_22 = arith.constant 0 : index
      %c0_23 = arith.constant 0 : index
      %c0_24 = arith.constant 0 : index
      %39 = vector.load %arg4[%c0_22, %c0_23, %c0_24] : memref<1x8x128xf32, #tpu.memory_space<vmem>>, vector<1x8x128xf32>
      tpu.vector_store %arg4[%c0_22, %c0_23, %c0_24], %38 {strides = array<i32>} : memref<1x8x128xf32, #tpu.memory_space<vmem>>, vector<1x8x128xf32>,
    } else {
    }
    return
  }
  func.func @transform_0(%arg0: i32, %arg1: i32) -> (i32, i32) {
    %c0_i32 = arith.constant 0 : i32
    return %arg0, %arg1 : i32, i32
  }
  func.func @transform_1(%arg0: i32, %arg1: i32) -> (i32, i32) {
    %c0_i32 = arith.constant 0 : i32
    %c0_i32_0 = arith.constant 0 : i32
    return %c0_i32, %arg1 : i32, i32
  }
  func.func @transform_2(%arg0: i32, %arg1: i32) -> (i32, i32, i32) {
    %c0_i32 = arith.constant 0 : i32
    %c0_i32_0 = arith.constant 0 : i32
    %c0_i32_1 = arith.constant 0 : i32
    return %arg0, %c0_i32, %c0_i32_0 : i32, i32, i32
  }
}

</mosaic_0001>

<bundles_post_ra>
// kernel: tpu_custom_call.1
= control target key start
LH: loop header
LB: loop body
LE: loop exit
PB: predicated region body
PF: predicated region fallthrough
CT: control target
= control target key end

     0   :  { %7 = vsyncpa [#allocation5], 0  ;;  %s218_s0 = inlined_call_operand.hbm [shape: f32[8,128], index: 0, kind: input, shape index: {}]   ;;  %s219_s1 = inlined_call_operand.vmem [shape: f32[1,128], index: 1, kind: input, shape index: {}]   ;;  %s220_s2 = inlined_call_operand.hbm [shape: f32[1,8,128], index: 2, kind: output, shape index: {}]  }
   0x1   :  { %8 = vsyncpa [#allocation6], 0  ;;  %s165_s9 = smov [#allocation4]   ;;  %s117_s13 = scalar_lea.hbm %s218_s0, 128 }
   0x2   :  { %s15_s10 = sshll.u32 %s165_s9, 4  ;;  %p118_p0 = scmp.ne.s32.totalorder %s218_s0, %s117_s13  ;;  %s16_s10 = int_to_ptr.vmem [resolvable:$true] %s15_s10 }
   0x3   :  { %p121_p1 = scmp.lt.u32.totalorder %s117_s13, %s218_s0 }
   0x5   :  { %p123_p2 = pnand %p121_p1, %p118_p0 }
   0x7   :  { %126 = shalt.err (!%p123_p2)
}
   0x8   :  { %s127_s18 = scalar_lea.vmem %s16_s10, 128  ;;  %p132_p4 = scmp.lt.s32.totalorder %s16_s10, %s16_s10 }
   0x9   :  { %p128_p3 = scmp.ne.s32.totalorder %s16_s10, %s127_s18  ;;  %p133_p5 = scmp.lt.s32.totalorder %s127_s18, %s127_s18 }
   0xb   :  { %p134_p6 = por %p133_p5, %p132_p4 }
   0xd   :  { %p135_p7 = pnand %p134_p6, %p128_p3 }
   0xf   :  { %138 = shalt.err (!%p135_p7)
}
  0x10   :  { %18 = dma.hbm_to_vmem [thread:$0]  %s218_s0, 128, %s16_s10, [#allocation5]  }
  0x11   :  { %161 = dma.done.wait [#allocation5], 128  }
  0x12   :  { %162 = vsyncadd [#allocation5], 4294967168  ;;  %vm28_vm0 = vcmask 7168   ;;  %v166_v0 = vmov -inf   ;;  %v31_v1 = vld [vmem:[#allocation4] sm:$0xff]  ;;  %v167_v4 = vmov 0  }
  0x13   :  { %29 = vst.msk [vmem:[#allocation2] sm:$0xff] %vm28_vm0, %v166_v0  ;;  %v101_v2 = vld [vmem:[%s219_s1] ss:$0 sm:$0xff]  ;;  %110 = vset.pattern.permute.xlu0 %v167_v4  ;;  %v168_v5 = vmov 0.0   ;;  %vm169_vm2 = vmmov 1   ;;  %s170_s0 = smov [#allocation7]  }
  0x14   :  { %v39_v3 = vadd.f32 %v101_v2, %v31_v1  ;;  %30 = vst.msk [vmem:[#allocation3] sm:$0xff] %vm28_vm0, %v168_v5  ;;  %s92_s1 = sshll.u32 %s170_s0, 4  ;;  %s93_s1 = int_to_ptr.vmem [resolvable:$true] %s92_s1 }
  0x15   :  { %s139_s24 = scalar_lea.vmem %s93_s1, 128  ;;  %p144_p9 = scmp.lt.s32.totalorder %s93_s1, %s93_s1 }
  0x16   :  { %41 = vmax.xlane.f32.xlu0 %v39_v3  ;;  %p140_p8 = scmp.ne.s32.totalorder %s93_s1, %s139_s24  ;;  %p145_p10 = scmp.lt.s32.totalorder %s139_s24, %s139_s24 }
  0x18   :  { %p146_p11 = por %p145_p10, %p144_p9 }
  0x1a   :  { %v40_v6 = vld [vmem:[#allocation2] sm:$0xff]  ;;  %p147_p12 = pnand %p146_p11, %p140_p8 }
  0x1b   :  { %v50_v17 = vld [vmem:[#allocation3] sm:$0xff] }
  0xa3   :  { %v42_v7 = vpop.xlane.xlu0 %41 }
  0xa4   :  { %v43_v8 = vmax.f32 %v40_v6, %v42_v7 }
  0xa6   :  { %65 = vst.msk [vmem:[#allocation2] sm:$0xff] %vm28_vm0, %v43_v8  ;;  %vm44_vm1 = vweird.f32 %v43_v8 }
  0xa7   :  { %vm45_vm3 = vmxor %vm44_vm1, %vm169_vm2 }
  0xa8   :  { %v46_v9 = vsel %vm45_vm3, %v43_v8, 0.0 }
  0xa9   :  { %54 = vperm.xlu0 %110, %v46_v9   ;;  %v47_v10 = vsub.f32 %v40_v6, %v46_v9 }
  0xab   :  { %v48_v15 = vmul.f32 1.442695, %v47_v10 }
  0xad   :  { %v69_v24 = vld [vmem:[#allocation2] sm:$0xff] }
 0x128   :  { %v55_v11 = vpop.permute.xlu0 %54 }
 0x129   :  { %v57_v12 = vsub.f32 %v39_v3, %v55_v11 }
 0x12b   :  { %v58_v13 = vmul.f32 1.442695, %v57_v12 }
 0x12d   :  { %111 = vpow2.f32 %v58_v13 }
 0x12e   :  { %113 = vpow2.f32 %v48_v15 }
 0x137   :  { %v112_v14 = vpop.eup %111 }
 0x138   :  { %60 = vadd.xlane.f32.xlu1 %v112_v14  ;;  %v114_v16 = vpop.eup %113 }
 0x139   :  { %v51_v18 = vmul.f32 %v114_v16, %v50_v17 }
 0x1c5   :  { %v61_v19 = vpop.xlane.xlu1 %60 }
 0x1c6   :  { %v62_v20 = vadd.f32 %v61_v19, %v51_v18 }
 0x1c8   :  { %64 = vst.msk [vmem:[#allocation3] sm:$0xff] %vm28_vm0, %v62_v20 }
 0x1cf   :  { %v70_v21 = vld [vmem:[#allocation3] sm:$0xff] }
 0x1d0   :  { %115 = vlog2.f32 %v70_v21 }
 0x1da   :  { %v116_v22 = vpop.eup %115 }
 0x1db   :  { %v72_v23 = vmul.f32 0.6931472, %v116_v22 }
 0x1dd   :  { %v73_v25 = vadd.f32 %v72_v23, %v69_v24 }
 0x1df   :  { %v74_v26 = vsel %vm28_vm0, %v73_v25, 0.0 }
 0x1e0   :  { %75 = vadd.xlane.f32.xlu1 %v74_v26 }
 0x26d   :  { %v76_v27 = vpop.xlane.xlu1 %75 }
 0x26e   :  { %v77_v28 = vrot.slane %v76_v27, 4 }
 0x270   :  { %v78_v29 = vadd.f32 %v77_v28, %v76_v27 }
 0x272   :  { %v79_v30 = vrot.slane %v78_v29, 2 }
 0x274   :  { %v80_v31 = vadd.f32 %v79_v30, %v78_v29 }
 0x276   :  { %v81_v32 = vrot.slane %v80_v31, 1 }
 0x278   :  { %v82_v33 = vadd.f32 %v81_v32, %v80_v31 }
 0x27a   :  { %102 = vpush %v82_v33 }
 0x2ab   :  { %s103_s23 = spop %102 }
 0x2ac   :  { %v84_v34 = vstv %s103_s23 }
 0x2ad   :  { %85 = vst [vmem:[#allocation7] sm:$0xff] %v84_v34 }
 0x2ae   :  { %150 = shalt.err (!%p147_p12)
}
 0x2af   :  { %s151_s27 = scalar_lea.hbm %s220_s2, 128 }
 0x2b0   :  { %p152_p13 = scmp.ne.s32.totalorder %s220_s2, %s151_s27  ;;  %p155_p0 = scmp.lt.u32.totalorder %s151_s27, %s220_s2 }
 0x2b2   :  { %p157_p1 = pnand %p155_p0, %p152_p13 }
 0x2b4   :  { %160 = shalt.err (!%p157_p1)
}
 0x2b5   :  { %95 = dma.vmem_to_hbm [thread:$0]  %s93_s1, 128, %s220_s2, [#allocation6]  }
 0x2b6   :  { %163 = dma.done.wait [#allocation6], 128  }
 0x2b7   :  { %164 = vsyncadd [#allocation6], 4294967168 }
 0x2b8   :  { %99 = vsyncpa [#allocation5], 1 }
 0x2b9   :  { %100 = vsyncpa [#allocation6], 1 }

</bundles_post_ra>
